<compile_context>
chip_gen: v7x
topology: tpu7x:2x2x1
jax: 0.10.0
libtpu: 0.0.40
codegen_flags: <defaults>
</compile_context>

<pallas_src>
import functools

import jax
import jax.numpy as jnp
from jax import lax
from jax.experimental import pallas as pl
from jax.experimental.pallas import tpu as pltpu

_GELU_C1 = 0.7978845608028654             # sqrt(2/pi)
_GELU_C2 = 0.7978845608028654 * 0.044715  # sqrt(2/pi) * 0.044715
_INV_SQRT2 = 0.7071067811865476


def _gelu_f32(z, approximate):
    if approximate:
        # 0.5*z*(1 + tanh(z*(c1 + c2*z^2))) -- one fewer VALU mul than the
        # textbook z + 0.044715*z^3 form; tanh goes to the EUP slot.
        z2 = z * z
        return 0.5 * z * (1.0 + jnp.tanh(z * (_GELU_C1 + _GELU_C2 * z2)))
    # exact erf GELU ("gelu")
    return 0.5 * z * (1.0 + lax.erf(z * _INV_SQRT2))


def _matmul_nt(x, w, cast_bf16):
    # (tm, tk) x (tn, tk) -> (tm, tn): contract the last dim of both operands so
    # the weight can stay in its PyTorch (I, H) layout (no transpose in HBM).
    if cast_bf16:
        x = x.astype(jnp.bfloat16)
        w = w.astype(jnp.bfloat16)
    return lax.dot_general(
        x, w,
        dimension_numbers=(((1,), (1,)), ((), ())),
        preferred_element_type=jnp.float32,
    )


def _kernel_full_k(x_ref, w_ref, b_ref, o_ref, *, approximate, cast_bf16):
    # Single K step: no accumulator scratch, no pl.when phases.
    z = _matmul_nt(x_ref[...], w_ref[...], cast_bf16)
    z = z + b_ref[...].astype(jnp.float32)
    o_ref[...] = _gelu_f32(z, approximate).astype(o_ref.dtype)


def _kernel_split_k(x_ref, w_ref, b_ref, o_ref, acc_ref, *, approximate, cast_bf16):
    k = pl.program_id(2)

    @pl.when(k == 0)
    def _():
        acc_ref[...] = jnp.zeros_like(acc_ref)

    acc_ref[...] += _matmul_nt(x_ref[...], w_ref[...], cast_bf16)

    @pl.when(k == pl.num_programs(2) - 1)
    def _():
        z = acc_ref[...] + b_ref[...].astype(jnp.float32)
        o_ref[...] = _gelu_f32(z, approximate).astype(o_ref.dtype)


def _round_up(x, m):
    return (x + m - 1) // m * m


def _pick_tk(H, max_tk):
    """K tile that divides H exactly (no padded FLOPs / DMA).

    Returns (tk, needs_k_padding).  tk == H collapses the reduction grid axis.
    """
    if H <= max_tk:
        return H, False
    t = (max_tk // 128) * 128
    while t >= 128:
        if H % t == 0:
            return t, False
        t -= 128
    return (max_tk // 128) * 128, True  # rare fallback: zero-pad K


@functools.partial(
    jax.jit,
    static_argnames=("hidden_act", "tm", "tn", "max_tk", "cast_to_bf16"),
)
def paperlm_intermediate(hidden_states, weight, bias, *, hidden_act="gelu_new",
                         tm=512, tn=1024, max_tk=1024, cast_to_bf16=False):
    """hidden_states: (..., H); weight: (I, H) (PyTorch nn.Linear layout); bias: (I,)."""
    if hidden_act in ("gelu_new", "gelu_pytorch_tanh", "gelu_tanh"):
        approximate = True
    elif hidden_act == "gelu":
        approximate = False
    else:
        raise NotImplementedError(f"hidden_act={hidden_act!r}")

    orig_shape = hidden_states.shape
    H = orig_shape[-1]
    I = weight.shape[0]

    x2 = hidden_states.reshape(-1, H)  # free, no HBM copy
    M = x2.shape[0]

    # ---- tile selection -------------------------------------------------
    # M / I tiles: full dim when small (block == full dim is always legal),
    # otherwise the (8/128, and 256-wide-MXU friendly) defaults.  Ragged M / I
    # edges are handled by cdiv grids + partial blocks, not by padding copies.
    tm = M if M <= tm else tm
    tn = I if I <= tn else tn

    # K tile: divides H (typically tk == H -> reduction axis collapses).
    tk, pad_k = _pick_tk(H, max_tk)
    w2 = weight
    b2 = bias.reshape(1, I)
    Hk = H
    if pad_k:
        # Fallback only (H huge and with no 128-multiple divisor <= max_tk):
        # zero-pad K so the reduction stays exact.
        Hk = _round_up(H, tk)
        x2 = jnp.pad(x2, ((0, 0), (0, Hk - H)))
        w2 = jnp.pad(weight, ((0, 0), (0, Hk - H)))

    grid_m = pl.cdiv(M, tm)
    grid_n = pl.cdiv(I, tn)
    grid_k = Hk // tk

    # v7x megacore: if everything fits a single output tile but I is big enough,
    # split the intermediate dim so both TensorCores get a parallel block.
    if grid_m == 1 and grid_n == 1 and I > 256:
        tn = _round_up((I + 1) // 2, 128)
        grid_n = pl.cdiv(I, tn)

    split_k = grid_k > 1
    kernel_kwargs = dict(approximate=approximate, cast_bf16=cast_to_bf16)

    if not split_k:
        kernel = functools.partial(_kernel_full_k, **kernel_kwargs)
        grid = (grid_m, grid_n)
        in_specs = [
            pl.BlockSpec((tm, tk), lambda i, j: (i, 0)),   # x tile
            pl.BlockSpec((tn, tk), lambda i, j: (j, 0)),   # W tile (PyTorch layout)
            pl.BlockSpec((1, tn), lambda i, j: (0, j)),    # bias tile
        ]
        out_specs = pl.BlockSpec((tm, tn), lambda i, j: (i, j))
        scratch_shapes = []
        dim_sem = ("parallel", "parallel")
    else:
        kernel = functools.partial(_kernel_split_k, **kernel_kwargs)
        grid = (grid_m, grid_n, grid_k)
        in_specs = [
            pl.BlockSpec((tm, tk), lambda i, j, k: (i, k)),
            pl.BlockSpec((tn, tk), lambda i, j, k: (j, k)),
            pl.BlockSpec((1, tn), lambda i, j, k: (0, j)),
        ]
        out_specs = pl.BlockSpec((tm, tn), lambda i, j, k: (i, j))
        scratch_shapes = [pltpu.VMEM((tm, tn), jnp.float32)]
        dim_sem = ("parallel", "parallel", "arbitrary")

    itemsize = x2.dtype.itemsize
    out_itemsize = hidden_states.dtype.itemsize

    # VMEM budget: double-buffered x/W/bias/out tiles (+ f32 acc when split-K),
    # with headroom; never claim the whole 64 MiB of a v7x TensorCore.
    footprint = 2 * (tm * tk + tn * tk) * itemsize
    footprint += 2 * tn * bias.dtype.itemsize
    footprint += 2 * tm * tn * out_itemsize
    if split_k:
        footprint += tm * tn * 4
    vmem_limit = min(48 * 1024 * 1024, max(16 * 1024 * 1024, int(footprint * 3 // 2)))

    cost = pl.CostEstimate(
        flops=2 * M * Hk * I,
        transcendentals=M * I,
        bytes_accessed=(M * Hk * itemsize * grid_n          # X streamed once per n-tile
                        + I * Hk * itemsize * grid_m        # W streamed once per m-tile
                        + M * I * out_itemsize              # output written once
                        + I * bias.dtype.itemsize * grid_m),
    )

    out = pl.pallas_call(
        kernel,
        out_shape=jax.ShapeDtypeStruct((M, I), hidden_states.dtype),
        grid_spec=pltpu.PrefetchScalarGridSpec(
            num_scalar_prefetch=0,
            grid=grid,
            in_specs=in_specs,
            out_specs=out_specs,
            scratch_shapes=scratch_shapes,
        ),
        compiler_params=pltpu.CompilerParams(
            dimension_semantics=dim_sem,
            vmem_limit_bytes=vmem_limit,
        ),
        cost_estimate=cost,
    )(x2, w2, b2)

    return out.reshape(orig_shape[:-1] + (I,))


def _reference(hidden_states, weight, bias, approximate=True):
    z = jnp.einsum("...h,ih->...i", hidden_states, weight) + bias
    return jax.nn.gelu(z, approximate=approximate)


if __name__ == "__main__":
    key = jax.random.PRNGKey(0)
    k1, k2, k3 = jax.random.split(key, 3)

    # Small shapes consistent with the module: batch=2, seq=8,
    # hidden_size=32, intermediate_size=128 (= 4 * hidden).
    B, S, H, I = 2, 8, 32, 128
    x = jax.random.normal(k1, (B, S, H), dtype=jnp.float32)
    weight = jax.random.normal(k2, (I, H), dtype=jnp.float32) * (1.0 / jnp.sqrt(H))
    bias = jax.random.normal(k3, (I,), dtype=jnp.float32) * 0.02

    out = paperlm_intermediate(x, weight, bias)
    jax.block_until_ready(out)
    ref = _reference(x, weight, bias)
    assert out.shape == (B, S, I), out.shape
    err = float(jnp.max(jnp.abs(out - ref)))
    assert err < 1e-3, f"max abs err {err}"

    # Second check: ragged M / I handled via cdiv grids + partial blocks
    # (no padding copies in the wrapper).
    B2, S2, H2, I2 = 2, 5, 48, 192
    x2 = jax.random.normal(k1, (B2, S2, H2), dtype=jnp.float32)
    w2 = jax.random.normal(k2, (I2, H2), dtype=jnp.float32) * (1.0 / jnp.sqrt(H2))
    b2 = jax.random.normal(k3, (I2,), dtype=jnp.float32) * 0.02
    out2 = paperlm_intermediate(x2, w2, b2, tm=8, tn=128)
    jax.block_until_ready(out2)
    ref2 = _reference(x2, w2, b2)
    assert out2.shape == (B2, S2, I2), out2.shape
    err2 = float(jnp.max(jnp.abs(out2 - ref2)))
    assert err2 < 1e-3, f"max abs err (ragged) {err2}"

    print("KERNEL_OK")
</pallas_src>

<mosaic_0001>
module attributes {stable_mosaic.version = 11 : i64} {
  func.func @_kernel_full_k(%arg0: i32, %arg1: i32, %arg2: memref<16x32xf32, #tpu.memory_space<vmem>>, %arg3: memref<128x32xf32, #tpu.memory_space<vmem>>, %arg4: memref<1x128xf32, #tpu.memory_space<vmem>>, %arg5: memref<16x128xf32, #tpu.memory_space<vmem>>) attributes {dimension_semantics = [#tpu.dimension_semantics<parallel>, #tpu.dimension_semantics<parallel>], iteration_bounds = array<i64: 1, 1>, scalar_prefetch = 0 : i64, scratch_operands = 0 : i64, tpu.core_type = #tpu.core_type<tc>, window_params = [{transform_indices = @transform_0, window_bounds = array<i64: 16, 32>}, {transform_indices = @transform_1, window_bounds = array<i64: 128, 32>}, {transform_indices = @transform_2, window_bounds = array<i64: 1, 128>}, {transform_indices = @transform_3, window_bounds = array<i64: 16, 128>}]} {
    %c0 = arith.constant 0 : index
    %c0_0 = arith.constant 0 : index
    %0 = vector.load %arg2[%c0, %c0_0] : memref<16x32xf32, #tpu.memory_space<vmem>>, vector<16x32xf32>
    %c0_1 = arith.constant 0 : index
    %c0_2 = arith.constant 0 : index
    %1 = vector.load %arg3[%c0_1, %c0_2] : memref<128x32xf32, #tpu.memory_space<vmem>>, vector<128x32xf32>
    %cst = arith.constant dense<0.000000e+00> : vector<16x128xf32>
    %2 = tpu.matmul %0, %1, %cst {dimension_numbers = #tpu.dot_dimension_numbers<[1], [1], [0], [0], [0, 0, 1, 0], [], []>} : vector<16x32xf32>, vector<128x32xf32>, vector<16x128xf32> -> vector<16x128xf32>
    %c0_3 = arith.constant 0 : index
    %c0_4 = arith.constant 0 : index
    %3 = vector.load %arg4[%c0_3, %c0_4] : memref<1x128xf32, #tpu.memory_space<vmem>>, vector<1x128xf32>
    %4 = vector.broadcast %3 : vector<1x128xf32> to vector<16x128xf32>
    %5 = arith.addf %2, %4 : vector<16x128xf32>
    %6 = arith.mulf %5, %5 : vector<16x128xf32>
    %cst_5 = arith.constant 5.000000e-01 : f32
    %7 = vector.broadcast %cst_5 : f32 to vector<16x128xf32>
    %8 = arith.mulf %7, %5 : vector<16x128xf32>
    %cst_6 = arith.constant 0.0356774069 : f32
    %9 = vector.broadcast %cst_6 : f32 to vector<16x128xf32>
    %10 = arith.mulf %9, %6 : vector<16x128xf32>
    %cst_7 = arith.constant 0.797884583 : f32
    %11 = vector.broadcast %cst_7 : f32 to vector<16x128xf32>
    %12 = arith.addf %11, %10 : vector<16x128xf32>
    %13 = arith.mulf %5, %12 : vector<16x128xf32>
    %14 = math.tanh %13 : vector<16x128xf32>
    %cst_8 = arith.constant 1.000000e+00 : f32
    %15 = vector.broadcast %cst_8 : f32 to vector<16x128xf32>
    %16 = arith.addf %15, %14 : vector<16x128xf32>
    %17 = arith.mulf %8, %16 : vector<16x128xf32>
    %c0_9 = arith.constant 0 : index
    %c0_10 = arith.constant 0 : index
    %18 = vector.load %arg5[%c0_9, %c0_10] : memref<16x128xf32, #tpu.memory_space<vmem>>, vector<16x128xf32>
    tpu.vector_store %arg5[%c0_9, %c0_10], %17 {strides = array<i32>} : memref<16x128xf32, #tpu.memory_space<vmem>>, vector<16x128xf32>,
    return
  }
  func.func @transform_0(%arg0: i32, %arg1: i32) -> (i32, i32) {
    %c0_i32 = arith.constant 0 : i32
    %c0_i32_0 = arith.constant 0 : i32
    return %arg0, %c0_i32 : i32, i32
  }
  func.func @transform_1(%arg0: i32, %arg1: i32) -> (i32, i32) {
    %c0_i32 = arith.constant 0 : i32
    %c0_i32_0 = arith.constant 0 : i32
    return %arg1, %c0_i32 : i32, i32
  }
  func.func @transform_2(%arg0: i32, %arg1: i32) -> (i32, i32) {
    %c0_i32 = arith.constant 0 : i32
    %c0_i32_0 = arith.constant 0 : i32
    return %c0_i32, %arg1 : i32, i32
  }
  func.func @transform_3(%arg0: i32, %arg1: i32) -> (i32, i32) {
    %c0_i32 = arith.constant 0 : i32
    return %arg0, %arg1 : i32, i32
  }
}

</mosaic_0001>

<bundles_post_ra>
// kernel: paperlm_intermediate.1
= control target key start
LH: loop header
LB: loop body
LE: loop exit
PB: predicated region body
PF: predicated region fallthrough
CT: control target
= control target key end

     0   :  { %vm40_vm0 = vcmask 261120   ;;  %s487_s0 = inlined_call_operand.vmem [shape: f32[16,32], index: 0, kind: input, shape index: {}]   ;;  %s488_s1 = inlined_call_operand.vmem [shape: f32[128,32], index: 1, kind: input, shape index: {}]   ;;  %s489_s2 = inlined_call_operand.vmem [shape: f32[1,128], index: 2, kind: input, shape index: {}]   ;;  %s490_s3 = inlined_call_operand.hbm [shape: f32[16,128], index: 3, kind: output, shape index: {}]  }
   0x1   :  { %v17_v0 = vld [vmem:[%s488_s1] sm:$0xff]  ;;  %v18_v1 = vld [vmem:[%s488_s1 + $0x8] sm:$0xff]  ;;  %v19_v2 = vld [vmem:[%s488_s1 + $0x10] sm:$0xff] }
   0x2   :  { %v276_v3 = vpack.c.bf16 %v18_v1, %v17_v0  ;;  %vm389_vm1 = vmpackc.low %vm40_vm0, %vm40_vm0  ;;  %v20_v5 = vld [vmem:[%s488_s1 + $0x18] sm:$0xff]  ;;  %v15_v7 = vld [vmem:[%s487_s0] sm:$0xff] }
   0x3   :  { %v282_v6 = vpack.c.bf16 %v20_v5, %v19_v2  ;;  %v21_v8 = vld [vmem:[%s488_s1 + $0x20] sm:$0xff]  ;;  %v22_v9 = vld [vmem:[%s488_s1 + $0x28] sm:$0xff]  ;;  %273 = vmatprep.mubr.msk.f32.mxu0 %vm40_vm0, %v15_v7 }
   0x4   :  { %278 = vmatprep.subr.msk.bf16.mxu0 %vm389_vm1, %v276_v3 }
   0x5   :  { %281 = vmatpush3.bf16.xpose.msk.msra.mxu0 %vm389_vm1, %v276_v3 }
   0x6   :  { %284 = vmatprep.subr.msk.bf16.mxu0 %vm389_vm1, %v282_v6 }
   0x7   :  { %8 = vsyncpa [#allocation3], 0  ;;  %v288_v10 = vpack.c.bf16 %v22_v9, %v21_v8  ;;  %v23_v11 = vld [vmem:[%s488_s1 + $0x30] sm:$0xff]  ;;  %v24_v12 = vld [vmem:[%s488_s1 + $0x38] sm:$0xff] }
   0x8   :  { %v294_v13 = vpack.c.bf16 %v24_v12, %v23_v11  ;;  %v25_v14 = vld [vmem:[%s488_s1 + $0x40] sm:$0xff]  ;;  %v26_v15 = vld [vmem:[%s488_s1 + $0x48] sm:$0xff]  ;;  %v27_v17 = vld [vmem:[%s488_s1 + $0x50] sm:$0xff] }
   0x9   :  { %v300_v16 = vpack.c.bf16 %v26_v15, %v25_v14  ;;  %v28_v18 = vld [vmem:[%s488_s1 + $0x58] sm:$0xff]  ;;  %v29_v20 = vld [vmem:[%s488_s1 + $0x60] sm:$0xff]  ;;  %v30_v21 = vld [vmem:[%s488_s1 + $0x68] sm:$0xff] }
   0xa   :  { %v306_v19 = vpack.c.bf16 %v28_v18, %v27_v17  ;;  %v312_v22 = vpack.c.bf16 %v30_v21, %v29_v20  ;;  %v31_v23 = vld [vmem:[%s488_s1 + $0x70] sm:$0xff]  ;;  %v32_v24 = vld [vmem:[%s488_s1 + $0x78] sm:$0xff]  ;;  %v16_v26 = vld [vmem:[%s487_s0 + $0x8] sm:$0xff]  ;;  %s355_s0 = smov [#allocation2]  }
   0xb   :  { %v318_v25 = vpack.c.bf16 %v32_v24, %v31_v23  ;;  %v204_v27 = vld [vmem:[%s489_s2] ss:$0 sm:$0xff]  ;;  %s193_s1 = sshll.u32 %s355_s0, 4  ;;  %s194_s1 = int_to_ptr.vmem [resolvable:$true] %s193_s1 }
   0xc   :  { %s331_s2 = scalar_lea.vmem %s194_s1, 256  ;;  %p336_p1 = scmp.lt.s32.totalorder %s194_s1, %s194_s1 }
   0xd   :  { %287 = vmatpush3.bf16.xpose.msk.msra.mxu0 %vm389_vm1, %v282_v6  ;;  %p332_p0 = scmp.ne.s32.totalorder %s194_s1, %s331_s2  ;;  %p337_p2 = scmp.lt.s32.totalorder %s331_s2, %s331_s2 }
   0xe   :  { %290 = vmatprep.subr.msk.bf16.mxu0 %vm389_vm1, %v288_v10 }
   0xf   :  { %p338_p3 = por %p337_p2, %p336_p1 }
  0x11   :  { %p339_p4 = pnand %p338_p3, %p332_p0 }
  0x15   :  { %293 = vmatpush3.bf16.xpose.msk.msra.mxu0 %vm389_vm1, %v288_v10 }
  0x16   :  { %296 = vmatprep.subr.msk.bf16.mxu0 %vm389_vm1, %v294_v13 }
  0x1d   :  { %299 = vmatpush3.bf16.xpose.msk.msra.mxu0 %vm389_vm1, %v294_v13 }
  0x1e   :  { %302 = vmatprep.subr.msk.bf16.mxu0 %vm389_vm1, %v300_v16 }
  0x25   :  { %305 = vmatpush3.bf16.xpose.msk.msra.mxu0 %vm389_vm1, %v300_v16 }
  0x26   :  { %308 = vmatprep.subr.msk.bf16.mxu0 %vm389_vm1, %v306_v19 }
  0x2d   :  { %311 = vmatpush3.bf16.xpose.msk.msra.mxu0 %vm389_vm1, %v306_v19 }
  0x2e   :  { %314 = vmatprep.subr.msk.bf16.mxu0 %vm389_vm1, %v312_v22 }
  0x35   :  { %317 = vmatpush3.bf16.xpose.msk.msra.mxu0 %vm389_vm1, %v312_v22 }
  0x36   :  { %320 = vmatprep.subr.msk.bf16.mxu0 %vm389_vm1, %v318_v25 }
  0x3d   :  { %323 = vmatpush3.bf16.xpose.msk.msra.mxu0 %vm389_vm1, %v318_v25 }
  0x44   :  { %274 = vmatmul.mubr.msk.f32.vlgmr.msra.gmra.mrb[0].mxu0 %vm40_vm0, %v16_v26 }
 0x117   :  { %v275_v28 = vpop.f32.mrb[0].mxu0 }
 0x118   :  { %v167_v29 = vadd.f32 %v275_v28, %v204_v27  ;;  %v161_v30 = vpop.f32.mrb[1].mxu0 }
 0x119   :  { %v162_v31 = vadd.f32 %v204_v27, %v161_v30 }
 0x11a   :  { %v171_v32 = vmul.f32 %v167_v29, %v167_v29  ;;  %v173_v42 = vmul.f32 0.5, %v167_v29 }
 0x11b   :  { %v170_v33 = vmul.f32 %v162_v31, %v162_v31  ;;  %v172_v44 = vmul.f32 0.5, %v162_v31 }
 0x11c   :  { %v175_v34 = vmul.f32 0.035677407, %v171_v32 }
 0x11d   :  { %v174_v35 = vmul.f32 0.035677407, %v170_v33 }
 0x11e   :  { %v177_v36 = vadd.f32 0.7978846, %v175_v34 }
 0x11f   :  { %v176_v37 = vadd.f32 0.7978846, %v174_v35 }
 0x120   :  { %v179_v38 = vmul.f32 %v177_v36, %v167_v29 }
 0x121   :  { %v178_v39 = vmul.f32 %v176_v37, %v162_v31 }
 0x122   :  { %327 = vtanh.f32 %v179_v38 }
 0x123   :  { %329 = vtanh.f32 %v178_v39 }
 0x12c   :  { %v328_v40 = vpop.eup %327 }
 0x12d   :  { %v330_v41 = vpop.eup %329  ;;  %v183_v43 = vadd.f32 1.0, %v328_v40 }
 0x12e   :  { %v182_v45 = vadd.f32 1.0, %v330_v41 }
 0x12f   :  { %v185_v46 = vmul.f32 %v183_v43, %v173_v42 }
 0x130   :  { %v184_v47 = vmul.f32 %v182_v45, %v172_v44 }
 0x131   :  { %187 = vst [vmem:[#allocation2 + $0x8] sm:$0xff] %v185_v46 }
 0x132   :  { %186 = vst [vmem:[#allocation2] sm:$0xff] %v184_v47 }
 0x133   :  { %342 = shalt.err (!%p339_p4)
}
 0x134   :  { %s343_s25 = scalar_lea.hbm %s490_s3, 256 }
 0x135   :  { %p344_p5 = scmp.ne.s32.totalorder %s490_s3, %s343_s25  ;;  %p347_p6 = scmp.lt.u32.totalorder %s343_s25, %s490_s3 }
 0x137   :  { %p349_p7 = pnand %p347_p6, %p344_p5 }
 0x139   :  { %352 = shalt.err (!%p349_p7)
}
 0x13a   :  { %s356_s30 = smov 128   ;;  %s357_s4 = smov 8  }
 0x13b   :  { %199 = dma.vmem_to_hbm [thread:$0]  %s194_s1, 256, %s490_s3, [#allocation3], %s356_s30, %s356_s30, %s357_s4  }
 0x13c   :  { %353 = dma.done.wait [#allocation3], 256  }
 0x13d   :  { %354 = vsyncadd [#allocation3], 4294967040 }
 0x13e   :  { %203 = vsyncpa [#allocation3], 1 }

</bundles_post_ra>
